<compile_context>
chip_gen: v6e
topology: v6e:2x2x1
jax: 0.10.0
libtpu: 0.0.40
codegen_flags: <defaults>
</compile_context>

<pallas_src>
import functools

import jax
import jax.numpy as jnp
from jax.experimental import pallas as pl
from jax.experimental.pallas import tpu as pltpu


def gaussian_encoder_kernel(
    x_ref,
    w1_ref, b1_ref,
    w2_ref, b2_ref,
    w3_ref, b3_ref,
    wh_ref, bh_ref,          # fused [mean | 0.5*log_var] head
    means_ref, stds_ref,     # (bt, latent) f32 outputs
    *,
    latent_dim,
):
    """Fused MLP encoder for one batch tile.

    All matmuls hit the MXU in bf16 with f32 accumulation; bias/ReLU stay f32
    on the VPU; the std transform is a single exp() on the var half (the 0.5
    factor is pre-folded into the head weights).
    """
    cd = w1_ref.dtype  # compute dtype for MXU inputs (bf16 by default)

    h = jnp.dot(x_ref[...], w1_ref[...], preferred_element_type=jnp.float32) + b1_ref[...]
    h = jnp.maximum(h, 0.0)

    h = jnp.dot(h.astype(cd), w2_ref[...], preferred_element_type=jnp.float32) + b2_ref[...]
    h = jnp.maximum(h, 0.0)

    h = jnp.dot(h.astype(cd), w3_ref[...], preferred_element_type=jnp.float32) + b3_ref[...]
    h = jnp.maximum(h, 0.0)

    # Single fused head matmul: columns [0, latent) are the means, columns
    # [latent, 2*latent) are 0.5 * log_var.
    head = jnp.dot(h.astype(cd), wh_ref[...], preferred_element_type=jnp.float32) + bh_ref[...]

    means_ref[...] = head[:, :latent_dim].astype(means_ref.dtype)
    stds_ref[...] = jnp.exp(head[:, latent_dim:]).astype(stds_ref.dtype)


def _round_up(n, m):
    return ((n + m - 1) // m) * m


def gaussian_encoder(x, params, *, batch_tile=2048, compute_dtype=jnp.bfloat16,
                     out_dtype=jnp.float32):
    """Batch-tiled fused encoder.  Returns (z_means, z_stds)."""
    (w1, b1), (w2, b2), (w3, b3), (wm, bm), (wv, bv) = params
    B, in_dim = x.shape
    d1, d2, d3 = w1.shape[1], w2.shape[1], w3.shape[1]
    latent_dim = wm.shape[1]
    head_dim = 2 * latent_dim

    # --- Fuse the two heads; fold the 0.5 of exp(0.5*z) into the var head. ---
    head_w = jnp.concatenate([wm, 0.5 * wv], axis=1)    # (d3, 2*latent)
    head_b = jnp.concatenate([bm, 0.5 * bv], axis=1)    # (1, 2*latent)

    # --- bf16 for DMA / MXU inputs; biases stay f32 (f32 VPU math in-kernel). -
    cd = compute_dtype
    xq = x.astype(cd)
    w1q, w2q, w3q, whq = (w.astype(cd) for w in (w1, w2, w3, head_w))

    # --- Batch tiling ---------------------------------------------------------
    # Tile is a multiple of 8 (sublane), at most `batch_tile`, and -- when the
    # batch is big enough -- small enough that the grid has >= 2 steps so v7x's
    # two TensorCores both get work (dimension_semantics=("parallel",)).
    rB = _round_up(B, 8)
    bt = max(8, _round_up(min(batch_tile, rB), 8))
    if rB >= 16:
        bt = min(bt, _round_up(-(-rB // 2), 8))
    B_pad = _round_up(B, bt)
    if B_pad != B:
        xq = jnp.pad(xq, ((0, B_pad - B), (0, 0)))
    grid = (B_pad // bt,)

    # Constant-index blocks (weights/biases) stay VMEM-resident across steps.
    def full_spec(a):
        return pl.BlockSpec(a.shape, lambda i: (0,) * a.ndim)

    in_specs = [
        pl.BlockSpec((bt, in_dim), lambda i: (i, 0)),
        full_spec(w1q), full_spec(b1),
        full_spec(w2q), full_spec(b2),
        full_spec(w3q), full_spec(b3),
        full_spec(whq), full_spec(head_b),
    ]
    out_specs = (
        pl.BlockSpec((bt, latent_dim), lambda i: (i, 0)),
        pl.BlockSpec((bt, latent_dim), lambda i: (i, 0)),
    )
    out_shape = (
        jax.ShapeDtypeStruct((B_pad, latent_dim), out_dtype),
        jax.ShapeDtypeStruct((B_pad, latent_dim), out_dtype),
    )

    # --- Scheduler hints: cost estimate + explicit VMEM budget. --------------
    itemsize = jnp.dtype(out_dtype).itemsize
    weight_bytes = sum(int(a.size) * a.dtype.itemsize
                       for a in (w1q, b1, w2q, b2, w3q, b3, whq, head_b))
    flops = 2 * B_pad * (in_dim * d1 + d1 * d2 + d2 * d3 + d3 * head_dim)
    transcendentals = B_pad * latent_dim
    bytes_accessed = (B_pad * in_dim * xq.dtype.itemsize
                      + weight_bytes
                      + 2 * B_pad * latent_dim * itemsize)
    cost = pl.CostEstimate(flops=flops, transcendentals=transcendentals,
                           bytes_accessed=bytes_accessed)

    # Per-step footprint: double-buffered x tile + double-buffered outputs +
    # resident weights + f32 intermediates; 2x headroom, clamped to [32, 64] MiB
    # so it is safe on every generation (v7x has 64 MiB physical per TC).
    act_bytes = bt * (in_dim * xq.dtype.itemsize + (d1 + d2 + d3 + head_dim) * 4)
    vmem_est = (2 * bt * in_dim * xq.dtype.itemsize
                + 2 * 2 * bt * latent_dim * itemsize
                + 2 * weight_bytes
                + 2 * act_bytes)
    vmem_limit = int(min(max(2 * vmem_est, 32 << 20), 64 << 20))

    kernel = functools.partial(gaussian_encoder_kernel, latent_dim=latent_dim)

    z_means, z_stds = pl.pallas_call(
        kernel,
        grid=grid,
        in_specs=in_specs,
        out_specs=out_specs,
        out_shape=out_shape,
        compiler_params=pltpu.CompilerParams(
            dimension_semantics=("parallel",),
            vmem_limit_bytes=vmem_limit,
        ),
        cost_estimate=cost,
    )(xq, w1q, b1, w2q, b2, w3q, b3, whq, head_b)

    if B_pad != B:
        z_means = z_means[:B]
        z_stds = z_stds[:B]
    return z_means, z_stds


def init_params(key, input_dim, layers_dims, latent_dim):
    """Deterministic synthetic parameters (no checkpoint loading)."""
    dims = [(input_dim, layers_dims[0]),
            (layers_dims[0], layers_dims[1]),
            (layers_dims[1], layers_dims[2]),
            (layers_dims[2], latent_dim),
            (layers_dims[2], latent_dim)]
    params = []
    for (din, dout) in dims:
        key, kw, kb = jax.random.split(key, 3)
        bound = 1.0 / jnp.sqrt(din)  # matches nn.Linear default init range
        w = jax.random.uniform(kw, (din, dout), jnp.float32, -bound, bound)
        b = jax.random.uniform(kb, (1, dout), jnp.float32, -bound, bound)
        params.append((w, b))
    return params


def reference_forward(x, params, compute_dtype=jnp.bfloat16):
    """Pure-JAX reference mimicking the kernel's bf16-in / f32-accumulate math.

    exp(0.5*z) == sqrt(exp(z)) == the PyTorch var_transformation, without the
    intermediate-exp overflow.
    """
    (w1, b1), (w2, b2), (w3, b3), (wm, bm), (wv, bv) = params
    cd = compute_dtype
    h = jnp.maximum(jnp.dot(x.astype(cd), w1.astype(cd),
                            preferred_element_type=jnp.float32) + b1, 0.0)
    h = jnp.maximum(jnp.dot(h.astype(cd), w2.astype(cd),
                            preferred_element_type=jnp.float32) + b2, 0.0)
    h = jnp.maximum(jnp.dot(h.astype(cd), w3.astype(cd),
                            preferred_element_type=jnp.float32) + b3, 0.0)
    z_means = jnp.dot(h.astype(cd), wm.astype(cd),
                      preferred_element_type=jnp.float32) + bm
    z_stds = jnp.exp(0.5 * (jnp.dot(h.astype(cd), wv.astype(cd),
                                    preferred_element_type=jnp.float32) + bv))
    return z_means, z_stds


if __name__ == "__main__":
    input_dim = 32
    layers_dims = (64, 64, 32)
    latent_dim = 16
    batch = 20  # deliberately not a multiple of 8 to exercise padding

    key = jax.random.PRNGKey(0)
    key, kx = jax.random.split(key)
    x = jax.random.normal(kx, (batch, input_dim), jnp.float32)
    params = init_params(key, input_dim, layers_dims, latent_dim)

    # Default tile (grid of 2 steps for this batch because of the >=2-step cap).
    z_means, z_stds = gaussian_encoder(x, params)
    jax.block_until_ready((z_means, z_stds))

    # Small tile -> multi-step grid with batch padding, same results expected.
    z_means2, z_stds2 = gaussian_encoder(x, params, batch_tile=8)
    jax.block_until_ready((z_means2, z_stds2))

    ref_means, ref_stds = reference_forward(x, params)
    assert z_means.shape == (batch, latent_dim) and z_stds.shape == (batch, latent_dim)
    assert jnp.allclose(z_means, ref_means, atol=1e-2, rtol=1e-2)
    assert jnp.allclose(z_stds, ref_stds, atol=1e-2, rtol=1e-2)
    assert jnp.allclose(z_means2, ref_means, atol=1e-2, rtol=1e-2)
    assert jnp.allclose(z_stds2, ref_stds, atol=1e-2, rtol=1e-2)

    print("KERNEL_OK")
</pallas_src>

<mosaic_0001>
module attributes {stable_mosaic.version = 11 : i64} {
  func.func @gaussian_encoder_kernel(%arg0: i32, %arg1: memref<16x32xbf16, #tpu.memory_space<vmem>>, %arg2: memref<32x64xbf16, #tpu.memory_space<vmem>>, %arg3: memref<1x64xf32, #tpu.memory_space<vmem>>, %arg4: memref<64x64xbf16, #tpu.memory_space<vmem>>, %arg5: memref<1x64xf32, #tpu.memory_space<vmem>>, %arg6: memref<64x32xbf16, #tpu.memory_space<vmem>>, %arg7: memref<1x32xf32, #tpu.memory_space<vmem>>, %arg8: memref<32x32xbf16, #tpu.memory_space<vmem>>, %arg9: memref<1x32xf32, #tpu.memory_space<vmem>>, %arg10: memref<16x16xf32, #tpu.memory_space<vmem>>, %arg11: memref<16x16xf32, #tpu.memory_space<vmem>>) attributes {dimension_semantics = [#tpu.dimension_semantics<parallel>], iteration_bounds = array<i64: 2>, scalar_prefetch = 0 : i64, scratch_operands = 0 : i64, tpu.core_type = #tpu.core_type<tc>, window_params = [{transform_indices = @transform_0, window_bounds = array<i64: 16, 32>}, {pipeline_mode = #tpu.pipeline_mode<synchronous>, transform_indices = @transform_1, window_bounds = array<i64: 32, 64>}, {pipeline_mode = #tpu.pipeline_mode<synchronous>, transform_indices = @transform_2, window_bounds = array<i64: 1, 64>}, {pipeline_mode = #tpu.pipeline_mode<synchronous>, transform_indices = @transform_3, window_bounds = array<i64: 64, 64>}, {pipeline_mode = #tpu.pipeline_mode<synchronous>, transform_indices = @transform_4, window_bounds = array<i64: 1, 64>}, {pipeline_mode = #tpu.pipeline_mode<synchronous>, transform_indices = @transform_5, window_bounds = array<i64: 64, 32>}, {pipeline_mode = #tpu.pipeline_mode<synchronous>, transform_indices = @transform_6, window_bounds = array<i64: 1, 32>}, {pipeline_mode = #tpu.pipeline_mode<synchronous>, transform_indices = @transform_7, window_bounds = array<i64: 32, 32>}, {pipeline_mode = #tpu.pipeline_mode<synchronous>, transform_indices = @transform_8, window_bounds = array<i64: 1, 32>}, {transform_indices = @transform_9, window_bounds = array<i64: 16, 16>}, {transform_indices = @transform_10, window_bounds = array<i64: 16, 16>}]} {
    %c0 = arith.constant 0 : index
    %c0_0 = arith.constant 0 : index
    %0 = vector.load %arg1[%c0, %c0_0] : memref<16x32xbf16, #tpu.memory_space<vmem>>, vector<16x32xbf16>
    %c0_1 = arith.constant 0 : index
    %c0_2 = arith.constant 0 : index
    %1 = vector.load %arg2[%c0_1, %c0_2] : memref<32x64xbf16, #tpu.memory_space<vmem>>, vector<32x64xbf16>
    %cst = arith.constant dense<0.000000e+00> : vector<16x64xf32>
    %2 = tpu.matmul %0, %1, %cst {dimension_numbers = #tpu.dot_dimension_numbers<[1], [0], [0], [1], [0, 0, 1, 1], [], []>} : vector<16x32xbf16>, vector<32x64xbf16>, vector<16x64xf32> -> vector<16x64xf32>
    %c0_3 = arith.constant 0 : index
    %c0_4 = arith.constant 0 : index
    %3 = vector.load %arg3[%c0_3, %c0_4] : memref<1x64xf32, #tpu.memory_space<vmem>>, vector<1x64xf32>
    %4 = vector.broadcast %3 : vector<1x64xf32> to vector<16x64xf32>
    %5 = arith.addf %2, %4 : vector<16x64xf32>
    %cst_5 = arith.constant 0.000000e+00 : f32
    %6 = vector.broadcast %cst_5 : f32 to vector<16x64xf32>
    %7 = arith.maximumf %5, %6 : vector<16x64xf32>
    %8 = arith.truncf %7 : vector<16x64xf32> to vector<16x64xbf16>
    %c0_6 = arith.constant 0 : index
    %c0_7 = arith.constant 0 : index
    %9 = vector.load %arg4[%c0_6, %c0_7] : memref<64x64xbf16, #tpu.memory_space<vmem>>, vector<64x64xbf16>
    %cst_8 = arith.constant dense<0.000000e+00> : vector<16x64xf32>
    %10 = tpu.matmul %8, %9, %cst_8 {dimension_numbers = #tpu.dot_dimension_numbers<[1], [0], [0], [1], [0, 0, 1, 1], [], []>} : vector<16x64xbf16>, vector<64x64xbf16>, vector<16x64xf32> -> vector<16x64xf32>
    %c0_9 = arith.constant 0 : index
    %c0_10 = arith.constant 0 : index
    %11 = vector.load %arg5[%c0_9, %c0_10] : memref<1x64xf32, #tpu.memory_space<vmem>>, vector<1x64xf32>
    %12 = vector.broadcast %11 : vector<1x64xf32> to vector<16x64xf32>
    %13 = arith.addf %10, %12 : vector<16x64xf32>
    %cst_11 = arith.constant 0.000000e+00 : f32
    %14 = vector.broadcast %cst_11 : f32 to vector<16x64xf32>
    %15 = arith.maximumf %13, %14 : vector<16x64xf32>
    %16 = arith.truncf %15 : vector<16x64xf32> to vector<16x64xbf16>
    %c0_12 = arith.constant 0 : index
    %c0_13 = arith.constant 0 : index
    %17 = vector.load %arg6[%c0_12, %c0_13] : memref<64x32xbf16, #tpu.memory_space<vmem>>, vector<64x32xbf16>
    %cst_14 = arith.constant dense<0.000000e+00> : vector<16x32xf32>
    %18 = tpu.matmul %16, %17, %cst_14 {dimension_numbers = #tpu.dot_dimension_numbers<[1], [0], [0], [1], [0, 0, 1, 1], [], []>} : vector<16x64xbf16>, vector<64x32xbf16>, vector<16x32xf32> -> vector<16x32xf32>
    %c0_15 = arith.constant 0 : index
    %c0_16 = arith.constant 0 : index
    %19 = vector.load %arg7[%c0_15, %c0_16] : memref<1x32xf32, #tpu.memory_space<vmem>>, vector<1x32xf32>
    %20 = vector.broadcast %19 : vector<1x32xf32> to vector<16x32xf32>
    %21 = arith.addf %18, %20 : vector<16x32xf32>
    %cst_17 = arith.constant 0.000000e+00 : f32
    %22 = vector.broadcast %cst_17 : f32 to vector<16x32xf32>
    %23 = arith.maximumf %21, %22 : vector<16x32xf32>
    %24 = arith.truncf %23 : vector<16x32xf32> to vector<16x32xbf16>
    %c0_18 = arith.constant 0 : index
    %c0_19 = arith.constant 0 : index
    %25 = vector.load %arg8[%c0_18, %c0_19] : memref<32x32xbf16, #tpu.memory_space<vmem>>, vector<32x32xbf16>
    %cst_20 = arith.constant dense<0.000000e+00> : vector<16x32xf32>
    %26 = tpu.matmul %24, %25, %cst_20 {dimension_numbers = #tpu.dot_dimension_numbers<[1], [0], [0], [1], [0, 0, 1, 1], [], []>} : vector<16x32xbf16>, vector<32x32xbf16>, vector<16x32xf32> -> vector<16x32xf32>
    %c0_21 = arith.constant 0 : index
    %c0_22 = arith.constant 0 : index
    %27 = vector.load %arg9[%c0_21, %c0_22] : memref<1x32xf32, #tpu.memory_space<vmem>>, vector<1x32xf32>
    %28 = vector.broadcast %27 : vector<1x32xf32> to vector<16x32xf32>
    %29 = arith.addf %26, %28 : vector<16x32xf32>
    %30 = vector.extract_strided_slice %29 {offsets = [0, 0], sizes = [16, 16], strides = [1, 1]} : vector<16x32xf32> to vector<16x16xf32>
    %c0_23 = arith.constant 0 : index
    %c0_24 = arith.constant 0 : index
    %31 = vector.load %arg10[%c0_23, %c0_24] : memref<16x16xf32, #tpu.memory_space<vmem>>, vector<16x16xf32>
    tpu.vector_store %arg10[%c0_23, %c0_24], %30 {strides = array<i32>} : memref<16x16xf32, #tpu.memory_space<vmem>>, vector<16x16xf32>,
    %32 = vector.extract_strided_slice %29 {offsets = [0, 16], sizes = [16, 16], strides = [1, 1]} : vector<16x32xf32> to vector<16x16xf32>
    %33 = math.exp %32 : vector<16x16xf32>
    %c0_25 = arith.constant 0 : index
    %c0_26 = arith.constant 0 : index
    %34 = vector.load %arg11[%c0_25, %c0_26] : memref<16x16xf32, #tpu.memory_space<vmem>>, vector<16x16xf32>
    tpu.vector_store %arg11[%c0_25, %c0_26], %33 {strides = array<i32>} : memref<16x16xf32, #tpu.memory_space<vmem>>, vector<16x16xf32>,
    return
  }
  func.func @transform_0(%arg0: i32) -> (i32, i32) {
    %c0_i32 = arith.constant 0 : i32
    %c0_i32_0 = arith.constant 0 : i32
    return %arg0, %c0_i32 : i32, i32
  }
  func.func @transform_1(%arg0: i32) -> (i32, i32) {
    %c0_i32 = arith.constant 0 : i32
    %c0_i32_0 = arith.constant 0 : i32
    %c0_i32_1 = arith.constant 0 : i32
    return %c0_i32, %c0_i32_0 : i32, i32
  }
  func.func @transform_2(%arg0: i32) -> (i32, i32) {
    %c0_i32 = arith.constant 0 : i32
    %c0_i32_0 = arith.constant 0 : i32
    %c0_i32_1 = arith.constant 0 : i32
    return %c0_i32, %c0_i32_0 : i32, i32
  }
  func.func @transform_3(%arg0: i32) -> (i32, i32) {
    %c0_i32 = arith.constant 0 : i32
    %c0_i32_0 = arith.constant 0 : i32
    %c0_i32_1 = arith.constant 0 : i32
    return %c0_i32, %c0_i32_0 : i32, i32
  }
  func.func @transform_4(%arg0: i32) -> (i32, i32) {
    %c0_i32 = arith.constant 0 : i32
    %c0_i32_0 = arith.constant 0 : i32
    %c0_i32_1 = arith.constant 0 : i32
    return %c0_i32, %c0_i32_0 : i32, i32
  }
  func.func @transform_5(%arg0: i32) -> (i32, i32) {
    %c0_i32 = arith.constant 0 : i32
    %c0_i32_0 = arith.constant 0 : i32
    %c0_i32_1 = arith.constant 0 : i32
    return %c0_i32, %c0_i32_0 : i32, i32
  }
  func.func @transform_6(%arg0: i32) -> (i32, i32) {
    %c0_i32 = arith.constant 0 : i32
    %c0_i32_0 = arith.constant 0 : i32
    %c0_i32_1 = arith.constant 0 : i32
    return %c0_i32, %c0_i32_0 : i32, i32
  }
  func.func @transform_7(%arg0: i32) -> (i32, i32) {
    %c0_i32 = arith.constant 0 : i32
    %c0_i32_0 = arith.constant 0 : i32
    %c0_i32_1 = arith.constant 0 : i32
    return %c0_i32, %c0_i32_0 : i32, i32
  }
  func.func @transform_8(%arg0: i32) -> (i32, i32) {
    %c0_i32 = arith.constant 0 : i32
    %c0_i32_0 = arith.constant 0 : i32
    %c0_i32_1 = arith.constant 0 : i32
    return %c0_i32, %c0_i32_0 : i32, i32
  }
  func.func @transform_9(%arg0: i32) -> (i32, i32) {
    %c0_i32 = arith.constant 0 : i32
    %c0_i32_0 = arith.constant 0 : i32
    return %arg0, %c0_i32 : i32, i32
  }
  func.func @transform_10(%arg0: i32) -> (i32, i32) {
    %c0_i32 = arith.constant 0 : i32
    %c0_i32_0 = arith.constant 0 : i32
    return %arg0, %c0_i32 : i32, i32
  }
}

</mosaic_0001>

<bundles_post_ra>
// kernel: tpu_custom_call.1
= control target key start
LH: loop header
LB: loop body
LE: loop exit
PB: predicated region body
PF: predicated region fallthrough
CT: control target
= control target key end

     0   :  { %16 = vsyncpa [#allocation3], 0  ;;  %s1266_s0 = inlined_call_operand.vmem [shape: bf16[32,32], index: 0, kind: input, shape index: {}]   ;;  %s1267_s1 = inlined_call_operand.hbm [shape: bf16[32,64], index: 1, kind: input, shape index: {}]   ;;  %s1268_s2 = inlined_call_operand.vmem [shape: f32[1,64], index: 2, kind: input, shape index: {}]   ;;  %s1269_s3 = inlined_call_operand.vmem [shape: bf16[64,64], index: 3, kind: input, shape index: {}]   ;;  %s1270_s4 = inlined_call_operand.vmem [shape: f32[1,64], index: 4, kind: input, shape index: {}]   ;;  %s1271_s5 = inlined_call_operand.vmem [shape: bf16[64,32], index: 5, kind: input, shape index: {}]   ;;  %s1272_s6 = inlined_call_operand.vmem [shape: f32[1,32], index: 6, kind: input, shape index: {}]   ;;  %s1273_s7 = inlined_call_operand.hbm [shape: bf16[32,32], index: 7, kind: input, shape index: {}]   ;;  %s1274_s8 = inlined_call_operand.vmem [shape: f32[1,32], index: 8, kind: input, shape index: {}]   ;;  %s1275_s9 = inlined_call_operand.vmem [shape: f32[32,16], index: 9, kind: output, shape index: {0}]   ;;  %s1276_s10 = inlined_call_operand.vmem [shape: f32[32,16], index: 10, kind: output, shape index: {1}]  }
   0x1   :  { %17 = vsyncpa [#allocation5], 0  ;;  %s1130_s13 = smov 0  }
   0x2 LB: > { %s855_s14 = sadd.s32 4294967295, %s1066_s13   ;;  %p857_p0 = scmp.ge.s32.totalorder %s1066_s13, 1  ;;  %s1066_s13 = sphi %s1130_s13, %s23_s13  }
   0x3   : > { %p274_p1 = scmp.lt.s32.totalorder %s1066_s13, 3  ;;  %s1068_s15 = smov [#allocation2]  }
   0x4   : > { %s286_s16 = sshll.u32 %s1068_s15, 4  ;;  %p1144_p3 = scmp.eq.s32.totalorder %s855_s14, 0  ;;  %s287_s16 = int_to_ptr.vmem [resolvable:$true] %s286_s16 }
   0x5   : > { %p1138_p2 = pnand %p857_p0, %p274_p1  ;;  %s1069_s19 = smov [#allocation4]  }
   0x6   : > { %s314_s20 = sshll.u32 %s1069_s19, 4  ;;  %s1011_s22 = scalar_lea.vmem %s287_s16, 256  ;;  %s315_s20 = int_to_ptr.vmem [resolvable:$true] %s314_s20 }
   0x7   : > { %p957_p4 = pneg %p1138_p2  ;;  %p1012_p7 = scmp.ne.s32.totalorder %s287_s16, %s1011_s22 }
   0x8   : > { %p1019_p10 = scmp.lt.s32.totalorder %s287_s16, %s287_s16  ;;  %p1020_p11 = scmp.lt.s32.totalorder %s1011_s22, %s1011_s22 }
   0x9   : > { %p1152_p5 = pnand %p1144_p3, %p957_p4 }
   0xa   : > { %p1021_p12 = por %p1020_p11, %p1019_p10 }
   0xb   : > { %p1002_p6 = pneg %p1152_p5 }
   0xd   : > { %p1014_p8 = pnand %p1012_p7, %p1002_p6 }
   0xf   : > { %p1015_p9 = pneg %p1014_p8 }
  0x11   : > { %p1022_p13 = pnand %p1021_p12, %p1015_p9 }
  0x13   : > { %1025 = shalt.err (!%p1022_p13)
}
  0x14   : > { %s1070_s23 = smov 64   ;;  %s1071_s24 = smov 4  }
  0x15   : > { %960 = dma.hbm_to_vmem [thread:$0]  (!%p1152_p5), %s1267_s1, 256, %s287_s16, [#allocation3], %s1070_s23, %s1070_s23, %s1071_s24  }
  0x16   : > { %s1037_s27 = scalar_lea.vmem %s315_s20, 256  ;;  %p1045_p7 = scmp.lt.s32.totalorder %s315_s20, %s315_s20 }
  0x17   : > { %p1038_p0 = scmp.ne.s32.totalorder %s315_s20, %s1037_s27  ;;  %p1046_p8 = scmp.lt.s32.totalorder %s1037_s27, %s1037_s27 }
  0x19   : > { %p1040_p1 = pnand %p1038_p0, %p1002_p6  ;;  %p1047_p10 = por %p1046_p8, %p1045_p7 }
  0x1b   : > { %p1041_p4 = pneg %p1040_p1 }
  0x1d   : > { %p1048_p9 = pnand %p1047_p10, %p1041_p4 }
  0x1f   : > { %1051 = shalt.err (!%p1048_p9)
}
  0x20   : > { %963 = dma.hbm_to_vmem [thread:$0]  (!%p1152_p5), %s1273_s7, 256, %s315_s20, [#allocation5], %s1070_s23, %s1070_s23, %s1071_s24  }
  0x21   : > { %342 = sbr.rel (%p1138_p2) target bundleno = 991 (0x3df), region = 56 }
  0x26   : > { %1057 = dma.done.wait (%p1144_p3), [#allocation3], 256  }
  0x27   : > { %1059 = vsyncadd (%p1144_p3), [#allocation3], 4294967040 }
  0x28   : > { %1061 = dma.done.wait (%p1144_p3), [#allocation5], 256  }
  0x29   : > { %1063 = vsyncadd (%p1144_p3), [#allocation5], 4294967040  ;;  %s864_s30 = sshll.u32 %s855_s14, 1  ;;  %v1072_v0 = vmov 0.0   ;;  %vm1073_vm0 = vmmov 0   ;;  %v983_v1 = vld [vmem:[#allocation2 + $0x8] sm:$0xff]  }
  0x2a   : > { %909 = vmatprep.subr.bf16.mxu0 %v1072_v0  ;;  %913 = vmatprep.mubr.msk.bf16.mxu0 %vm1073_vm0, %v1072_v0  ;;  %p390_p2 = scmp.lt.s32.totalorder %s864_s30, 3  ;;  %v984_v2 = vld [vmem:[#allocation2] sm:$0xff]   ;;  %v986_v3 = vld [vmem:[%s1269_s3 + $0x18] sm:$0xff]   ;;  %vm438_vm1 = vcmask 261120   ;;  %v987_v5 = vld [vmem:[%s1269_s3 + $0x10] sm:$0xff]   ;;  %vm525_vm2 = vcmask 523264  }
  0x2b   : > { %917 = vmatprep.subr.bf16.mxu1 %v1072_v0  ;;  %925 = vmatprep.mubr.msk.bf16.mxu1 %vm1073_vm0, %v1072_v0  ;;  %v988_v6 = vld [vmem:[%s1269_s3 + $0x8] sm:$0xff]   ;;  %v989_v7 = vld [vmem:[%s1269_s3] sm:$0xff]   ;;  %v990_v8 = vld [vmem:[%s1271_s5 + $0x18] sm:$0xff]   ;;  %vm726_vm3 = vcmask 130048  }
  0x2c   : > { %s1281_s30 = smov (!%p390_p2, %s864_s30), 3  ;;  %910 = vmatpush3.bf16.msra.mxu0 %v983_v1  ;;  %918 = vmatpush3.bf16.msra.mxu1 %v986_v3  ;;  %v870_v9 = vld [vmem:[%s1268_s2] ss:$0 sm:$0xff]  ;;  %v991_v19 = vld [vmem:[%s1271_s5 + $0x10] sm:$0xff]   ;;  %v992_v20 = vld [vmem:[%s1271_s5 + $0x8] sm:$0xff]  }
  0x2d   : > { %s865_s11 = sshll.u32 %s1281_s30, 2  ;;  %911 = vmatprep.subr.bf16.mxu0 %v1072_v0  ;;  %919 = vmatprep.subr.bf16.mxu1 %v1072_v0  ;;  %v993_v21 = vld [vmem:[%s1271_s5] sm:$0xff]   ;;  %v994_v32 = vld [vmem:[#allocation4 + $0x8] sm:$0xff]   ;;  %v995_v33 = vld [vmem:[#allocation4] sm:$0xff]   ;;  %s867_s20 = sshll.u32 %s1281_s30, 3 }
  0x2e   : > { %s393_s15 = scalar_lea.vmem %s1266_s0, %s865_s11  ;;  %v875_v22 = vld [vmem:[%s1270_s4] ss:$0 sm:$0xff]  ;;  %s399_s25 = scalar_lea.vmem %s1275_s9, %s867_s20 }
  0x2f   : > { %v985_v4 = vld [vmem:[%s393_s15] sm:$0xff]   ;;  %s1074_s30 = smov 112   ;;  %s405_s28 = scalar_lea.vmem %s1276_s10, %s867_s20 }
  0x30   : > { %912 = vmatpush3.bf16.msra.mxu0 %v984_v2  ;;  %920 = vmatpush3.bf16.msra.mxu1 %v987_v5  ;;  %v881_v34 = vld [vmem:[%s1272_s6] ss:$0 sm:$0xff] }
  0x31   : > { %929 = vmatprep.subr.bf16.mxu0 %v1072_v0  ;;  %921 = vmatprep.subr.bf16.mxu1 %v1072_v0  ;;  %v887_v44 = vld [vmem:[%s1274_s8] ss:$0 sm:$0xff] }
  0x33   : > { %914 = vmatmul.mubr.msk.bf16.vlgmr.msra.gmra.mxu0 %vm438_vm1, %v985_v4 }
  0x34   : > { %937 = vmatprep.mubr.msk.bf16.mxu0 %vm1073_vm0, %v1072_v0  ;;  %922 = vmatpush3.bf16.msra.mxu1 %v988_v6 }
  0x35   : > { %923 = vmatprep.subr.bf16.mxu1 %v1072_v0  ;;  %930 = vmatpush3.bf16.msra.mxu0 %v990_v8 }
  0x36   : > { %931 = vmatprep.subr.bf16.mxu0 %v1072_v0 }
  0x38   : > { %924 = vmatpush3.bf16.msra.mxu1 %v989_v7 }
  0x39   : > { %941 = vmatprep.subr.bf16.mxu1 %v1072_v0  ;;  %932 = vmatpush3.bf16.msra.mxu0 %v991_v19 }
  0x3a   : > { %933 = vmatprep.subr.bf16.mxu0 %v1072_v0 }
  0x3d   : > { %934 = vmatpush3.bf16.msra.mxu0 %v992_v20 }
  0x3e   : > { %935 = vmatprep.subr.bf16.mxu0 %v1072_v0 }
  0x41   : > { %936 = vmatpush3.bf16.msra.mxu0 %v993_v21 }
  0xf3   : > { %v476_v10 = vpop.f32.mrf.mxu0 }
  0xf4   : > { %v477_v12 = vadd.f32 %v870_v9, %v476_v10 }
  0xf5   : > { %v915_v11 = vpop.f32.mrf.mxu0 }
  0xf6   : > { %v483_v16 = vmax.f32 %v477_v12, 0.0 }
  0xf7   : > { %v479_v13 = vpop.f32.mrf.mxu0 }
  0xf8   : > { %v480_v14 = vadd.f32 %v870_v9, %v479_v13 }
  0xf9   : > { %v916_v15 = vpop.f32.mrf.mxu0 }
  0xfa   : > { %v484_v17 = vmax.f32 %v480_v14, 0.0 }
  0xfc   : > { %v485_v18 = vpack.c.bf16 %v484_v17, %v483_v16 }
  0xfe   : > { %926 = vmatmul.mubr.msk.bf16.vlgmr.msra.gmra.mxu1 %vm525_vm2, %v485_v18 }
  0xff   : > { %945 = vmatprep.mubr.msk.bf16.mxu1 %vm1073_vm0, %v1072_v0  ;;  %942 = vmatpush3.bf16.msra.mxu1 %v994_v32 }
 0x100   : > { %943 = vmatprep.subr.bf16.mxu1 %v1072_v0 }
 0x103   : > { %944 = vmatpush3.bf16.msra.mxu1 %v995_v33 }
 0x1be   : > { %v563_v23 = vpop.f32.mrf.mxu1 }
 0x1bf   : > { %v564_v25 = vadd.f32 %v875_v22, %v563_v23 }
 0x1c0   : > { %v927_v24 = vpop.f32.mrf.mxu1 }
 0x1c1   : > { %v570_v29 = vmax.f32 %v564_v25, 0.0 }
 0x1c2   : > { %v566_v26 = vpop.f32.mrf.mxu1 }
 0x1c3   : > { %v567_v27 = vadd.f32 %v875_v22, %v566_v26 }
 0x1c4   : > { %v928_v28 = vpop.f32.mrf.mxu1 }
 0x1c5   : > { %v571_v30 = vmax.f32 %v567_v27, 0.0 }
 0x1c7   : > { %v572_v31 = vpack.c.bf16 %v571_v30, %v570_v29 }
 0x1c9   : > { %938 = vmatmul.mubr.msk.bf16.vlgmr.msra.gmra.mxu0 %vm525_vm2, %v572_v31 }
 0x289   : > { %v649_v35 = vpop.f32.mrf.mxu0 }
 0x28a   : > { %v650_v37 = vadd.f32 %v881_v34, %v649_v35 }
 0x28b   : > { %v939_v36 = vpop.f32.mrf.mxu0 }
 0x28c   : > { %v656_v41 = vmax.f32 %v650_v37, 0.0 }
 0x28d   : > { %v652_v38 = vpop.f32.mrf.mxu0 }
 0x28e   : > { %v653_v39 = vadd.f32 %v881_v34, %v652_v38 }
 0x28f   : > { %v940_v40 = vpop.f32.mrf.mxu0 }
 0x290   : > { %v657_v42 = vmax.f32 %v653_v39, 0.0 }
 0x292   : > { %v658_v43 = vpack.c.bf16 %v657_v42, %v656_v41 }
 0x294   : > { %946 = vmatmul.mubr.msk.bf16.vlgmr.msra.gmra.mxu1 %vm438_vm1, %v658_v43 }
 0x354   : > { %v719_v45 = vpop.f32.mrf.mxu1 }
 0x355   : > { %v720_v46 = vadd.f32 %v887_v44, %v719_v45 }
 0x356   : > { %v947_v47 = vpop.f32.mrf.mxu1 }
 0x357   : > { %v729_v48 = vmul.f32 1.442695, %v720_v46  ;;  %727 = vst.msk [vmem:[%s399_s25] sm:$0xff] %vm726_vm3, %v720_v46 }
 0x358   : > { %v722_v49 = vpop.f32.mrf.mxu1 }
 0x359   : > { %996 = vpow2.f32 %v729_v48  ;;  %v723_v50 = vadd.f32 %v887_v44, %v722_v49 }
 0x35a   : > { %v948_v51 = vpop.f32.mrf.mxu1 }
 0x35b   : > { %v731_v52 = vmul.f32 1.442695, %v723_v50  ;;  %728 = vst.msk [vmem:[%s399_s25 + $0x8] sm:$0xff] %vm726_vm3, %v723_v50 }
 0x35d   : > { %998 = vpow2.f32 %v731_v52 }
 0x366   : > { %v997_v53 = vpop.eup %996 }
 0x367   : > { %735 = vrot.lane.b32.xlu0 %v997_v53, %s1074_s30 }
 0x36a   : > { %v999_v54 = vpop.eup %998 }
 0x36b   : > { %737 = vrot.lane.b32.xlu0 %v999_v54, %s1074_s30 }
 0x3d9   : > { %v736_v55 = vpop.permute.xlu0 %735 }
 0x3da   : > { %741 = vst.msk [vmem:[%s405_s28] sm:$0xff] %vm726_vm3, %v736_v55 }
 0x3dd   : > { %v738_v56 = vpop.permute.xlu0 %737 }
 0x3de   : > { %742 = vst.msk [vmem:[%s405_s28 + $0x8] sm:$0xff] %vm726_vm3, %v738_v56 }
 0x3df PF: > { %s23_s13 = sadd.s32 1, %s1066_s13  }
 0x3e0   : > { %p20_p3 = scmp.ge.s32.totalorder %s23_s13, 4  }
 0x3e2   :  { %22 = sbr.rel (!%p20_p3) target bundleno = 2 (0x2), region = 107 }
 0x3e7   :  { %782 = vsyncpa [#allocation3], 1 }
 0x3e8   :  { %784 = vsyncpa [#allocation3 + $0x1], 1 }
 0x3e9   :  { %785 = vsyncpa [#allocation5], 1 }

</bundles_post_ra>
